<compile_context>
chip_gen: v5e
topology: v5e:2x2
jax: 0.10.0
libtpu: 0.0.40
codegen_flags: <defaults>
</compile_context>

<pallas_src>
import jax
import jax.numpy as jnp
from jax import lax
from jax.experimental import pallas as pl
from jax.experimental.pallas import tpu as pltpu


def rnn_kernel(emb_ref, wih_ref, whh_ref, b_ref, wfc_ref, bfc_ref,
               out_ref, xw_ref):
    """Vanilla tanh-RNN over the sequence + final Linear.

    emb_ref : (S*Bp, Ep)  embedded tokens, flattened over (seq, padded batch)
    wih_ref : (Ep, Hp)    W_ih^T   (zero-padded)
    whh_ref : (Hp, Hp)    W_hh^T
    b_ref   : (1, Hp)     b_ih + b_hh
    wfc_ref : (Hp, Op)    W_fc^T
    bfc_ref : (1, Op)     b_fc
    out_ref : (Bp, Op)    fc(final hidden)
    xw_ref  : (S*Bp, Hp)  VMEM scratch for the hoisted input projection
    """
    sb = emb_ref.shape[0]
    bp = out_ref.shape[0]
    hp = whh_ref.shape[0]
    seq_len = sb // bp

    # (1) Hoisted input projection + fused bias: one big MXU matmul covering
    #     every timestep (no sequential dependency here).
    xw_ref[...] = (
        jnp.dot(emb_ref[...], wih_ref[...], preferred_element_type=jnp.float32)
        + b_ref[...]
    )

    # (2) Loop-invariant recurrent weight loaded once (no per-step re-load).
    whh = whh_ref[...]

    # (3) Serial recurrence: h carried in registers, fully unrolled.
    def step(t, h):
        start = pl.multiple_of(t * bp, bp)           # sublane-aligned slice
        x_t = xw_ref[pl.ds(start, bp), :]            # (Bp, Hp)
        return jnp.tanh(
            x_t + jnp.dot(h, whh, preferred_element_type=jnp.float32)
        )

    h0 = jnp.zeros((bp, hp), jnp.float32)
    h_final = lax.fori_loop(0, seq_len, step, h0, unroll=True)

    # (4) Final Linear on the last hidden state.
    out_ref[...] = (
        jnp.dot(h_final, wfc_ref[...], preferred_element_type=jnp.float32)
        + bfc_ref[...]
    )


def _round_up(x, m):
    return (x + m - 1) // m * m


def rnn_forward(text, params):
    """text: (seq_len, batch) int32 token ids. Returns (batch * output_dim,)."""
    emb_table = params["embedding"]            # (V, E)
    w_ih = params["w_ih"]                      # (H, E)  (PyTorch layout)
    w_hh = params["w_hh"]                      # (H, H)
    b_ih = params["b_ih"]                      # (H,)
    b_hh = params["b_hh"]                      # (H,)
    w_fc = params["w_fc"]                      # (O, H)
    b_fc = params["b_fc"]                      # (O,)

    S, B = text.shape
    E = emb_table.shape[1]
    H = w_hh.shape[0]
    O = w_fc.shape[0]

    # TPU-friendly padding: batch -> f32 sublane multiple (8), feature dims ->
    # lane multiple (128). Zero padding keeps the math exact (tanh(0)=0 keeps
    # padded hidden units at zero; padded batch rows are sliced off).
    Bp = _round_up(B, 8)
    Ep = _round_up(E, 128)
    Hp = _round_up(H, 128)
    Op = _round_up(O, 128)

    # Embedding lookup (glue, plain JAX gather).
    # TODO(synk): at production S/B, stream timestep tiles with a grid/BlockSpec
    # (or scalar-prefetch the token ids and gather rows in-kernel) instead of
    # materializing the whole (S, B, E) activation; also split batch across
    # TensorCores (dimension_semantics=("parallel",)) on v7x.
    embedded = jnp.take(emb_table, text, axis=0)                 # (S, B, E) f32
    embedded = jnp.pad(embedded, ((0, 0), (0, Bp - B), (0, Ep - E)))
    emb2d = embedded.reshape(S * Bp, Ep)                         # (S*Bp, Ep)

    wih_t = jnp.pad(w_ih.T, ((0, Ep - E), (0, Hp - H)))          # (Ep, Hp)
    whh_t = jnp.pad(w_hh.T, ((0, Hp - H), (0, Hp - H)))          # (Hp, Hp)
    b_comb = jnp.pad(b_ih + b_hh, (0, Hp - H)).reshape(1, Hp)    # (1, Hp)
    wfc_t = jnp.pad(w_fc.T, ((0, Hp - H), (0, Op - O)))          # (Hp, Op)
    bfc = jnp.pad(b_fc, (0, Op - O)).reshape(1, Op)              # (1, Op)

    vmem = pl.BlockSpec(memory_space=pltpu.MemorySpace.VMEM)
    out = pl.pallas_call(
        rnn_kernel,
        out_shape=jax.ShapeDtypeStruct((Bp, Op), jnp.float32),
        in_specs=[vmem] * 6,
        out_specs=vmem,
        scratch_shapes=[pltpu.VMEM((S * Bp, Hp), jnp.float32)],
    )(emb2d, wih_t, whh_t, b_comb, wfc_t, bfc)

    return out[:B, :O].reshape(-1)             # .view(-1)


def rnn_reference(text, params):
    """Pure-JAX reference mirroring the PyTorch forward."""
    emb = jnp.take(params["embedding"], text, axis=0)    # (S, B, E)
    H = params["w_hh"].shape[0]
    B = text.shape[1]

    def step(h, x_t):
        h_new = jnp.tanh(x_t @ params["w_ih"].T + params["b_ih"]
                         + h @ params["w_hh"].T + params["b_hh"])
        return h_new, None

    h0 = jnp.zeros((B, H), jnp.float32)
    h_final, _ = lax.scan(step, h0, emb)
    return (h_final @ params["w_fc"].T + params["b_fc"]).reshape(-1)


def init_params(key, input_dim, embedding_dim, hidden_dim, output_dim):
    ks = jax.random.split(key, 7)
    k = 1.0 / jnp.sqrt(hidden_dim)
    return {
        "embedding": jax.random.normal(ks[0], (input_dim, embedding_dim), jnp.float32),
        "w_ih": jax.random.uniform(ks[1], (hidden_dim, embedding_dim), jnp.float32, -k, k),
        "w_hh": jax.random.uniform(ks[2], (hidden_dim, hidden_dim), jnp.float32, -k, k),
        "b_ih": jax.random.uniform(ks[3], (hidden_dim,), jnp.float32, -k, k),
        "b_hh": jax.random.uniform(ks[4], (hidden_dim,), jnp.float32, -k, k),
        "w_fc": jax.random.uniform(ks[5], (output_dim, hidden_dim), jnp.float32, -k, k),
        "b_fc": jax.random.uniform(ks[6], (output_dim,), jnp.float32, -k, k),
    }


if __name__ == "__main__":
    INPUT_DIM = 100       # vocab size
    EMBEDDING_DIM = 32
    HIDDEN_DIM = 32
    OUTPUT_DIM = 1
    SEQ_LEN = 8
    BATCH = 2

    key = jax.random.PRNGKey(0)
    pkey, tkey = jax.random.split(key)
    params = init_params(pkey, INPUT_DIM, EMBEDDING_DIM, HIDDEN_DIM, OUTPUT_DIM)

    # text: (seq_len, batch) integer token ids
    text = jax.random.randint(tkey, (SEQ_LEN, BATCH), 0, INPUT_DIM, dtype=jnp.int32)

    out = jax.block_until_ready(rnn_forward(text, params))
    ref = jax.block_until_ready(rnn_reference(text, params))

    assert out.shape == (BATCH * OUTPUT_DIM,), out.shape
    assert jnp.allclose(out, ref, atol=1e-5, rtol=1e-5), (out, ref)
    print("KERNEL_OK")
</pallas_src>

<mosaic_0001>
module attributes {stable_mosaic.version = 11 : i64} {
  func.func @rnn_kernel(%arg0: memref<64x128xf32, #tpu.memory_space<vmem>>, %arg1: memref<128x128xf32, #tpu.memory_space<vmem>>, %arg2: memref<128x128xf32, #tpu.memory_space<vmem>>, %arg3: memref<1x128xf32, #tpu.memory_space<vmem>>, %arg4: memref<128x128xf32, #tpu.memory_space<vmem>>, %arg5: memref<1x128xf32, #tpu.memory_space<vmem>>, %arg6: memref<8x128xf32, #tpu.memory_space<vmem>>, %arg7: memref<64x128xf32, #tpu.memory_space<vmem>>) attributes {dimension_semantics = [], scalar_prefetch = 0 : i64, scratch_operands = 1 : i64, tpu.core_type = #tpu.core_type<tc>} {
    %c0 = arith.constant 0 : index
    %c0_0 = arith.constant 0 : index
    %0 = vector.load %arg0[%c0, %c0_0] : memref<64x128xf32, #tpu.memory_space<vmem>>, vector<64x128xf32>
    %c0_1 = arith.constant 0 : index
    %c0_2 = arith.constant 0 : index
    %1 = vector.load %arg1[%c0_1, %c0_2] : memref<128x128xf32, #tpu.memory_space<vmem>>, vector<128x128xf32>
    %cst = arith.constant dense<0.000000e+00> : vector<64x128xf32>
    %2 = tpu.matmul %0, %1, %cst {dimension_numbers = #tpu.dot_dimension_numbers<[1], [0], [0], [1], [0, 0, 1, 1], [], []>} : vector<64x128xf32>, vector<128x128xf32>, vector<64x128xf32> -> vector<64x128xf32>
    %c0_3 = arith.constant 0 : index
    %c0_4 = arith.constant 0 : index
    %3 = vector.load %arg3[%c0_3, %c0_4] : memref<1x128xf32, #tpu.memory_space<vmem>>, vector<1x128xf32>
    %4 = vector.broadcast %3 : vector<1x128xf32> to vector<64x128xf32>
    %5 = arith.addf %2, %4 : vector<64x128xf32>
    %c0_5 = arith.constant 0 : index
    %c0_6 = arith.constant 0 : index
    %6 = vector.load %arg7[%c0_5, %c0_6] : memref<64x128xf32, #tpu.memory_space<vmem>>, vector<64x128xf32>
    tpu.vector_store %arg7[%c0_5, %c0_6], %5 {strides = array<i32>} : memref<64x128xf32, #tpu.memory_space<vmem>>, vector<64x128xf32>,
    %c0_7 = arith.constant 0 : index
    %c0_8 = arith.constant 0 : index
    %7 = vector.load %arg2[%c0_7, %c0_8] : memref<128x128xf32, #tpu.memory_space<vmem>>, vector<128x128xf32>
    %cst_9 = arith.constant 0.000000e+00 : f32
    %8 = vector.broadcast %cst_9 : f32 to vector<8x128xf32>
    %c0_i32 = arith.constant 0 : i32
    %c8_i32 = arith.constant 8 : i32
    %9 = arith.muli %c0_i32, %c8_i32 : i32
    %10 = tpu.assume_multiple %9, 8 : i32
    %11 = arith.index_cast %10 : i32 to index
    %c0_10 = arith.constant 0 : index
    %12 = vector.load %arg7[%11, %c0_10] : memref<64x128xf32, #tpu.memory_space<vmem>>, vector<8x128xf32>
    %cst_11 = arith.constant dense<0.000000e+00> : vector<8x128xf32>
    %13 = tpu.matmul %8, %7, %cst_11 {dimension_numbers = #tpu.dot_dimension_numbers<[1], [0], [0], [1], [0, 0, 1, 1], [], []>} : vector<8x128xf32>, vector<128x128xf32>, vector<8x128xf32> -> vector<8x128xf32>
    %14 = arith.addf %12, %13 : vector<8x128xf32>
    %15 = math.tanh %14 : vector<8x128xf32>
    %c1_i32 = arith.constant 1 : i32
    %c8_i32_12 = arith.constant 8 : i32
    %16 = arith.muli %c1_i32, %c8_i32_12 : i32
    %17 = tpu.assume_multiple %16, 8 : i32
    %18 = arith.index_cast %17 : i32 to index
    %c0_13 = arith.constant 0 : index
    %19 = vector.load %arg7[%18, %c0_13] : memref<64x128xf32, #tpu.memory_space<vmem>>, vector<8x128xf32>
    %cst_14 = arith.constant dense<0.000000e+00> : vector<8x128xf32>
    %20 = tpu.matmul %15, %7, %cst_14 {dimension_numbers = #tpu.dot_dimension_numbers<[1], [0], [0], [1], [0, 0, 1, 1], [], []>} : vector<8x128xf32>, vector<128x128xf32>, vector<8x128xf32> -> vector<8x128xf32>
    %21 = arith.addf %19, %20 : vector<8x128xf32>
    %22 = math.tanh %21 : vector<8x128xf32>
    %c2_i32 = arith.constant 2 : i32
    %c8_i32_15 = arith.constant 8 : i32
    %23 = arith.muli %c2_i32, %c8_i32_15 : i32
    %24 = tpu.assume_multiple %23, 8 : i32
    %25 = arith.index_cast %24 : i32 to index
    %c0_16 = arith.constant 0 : index
    %26 = vector.load %arg7[%25, %c0_16] : memref<64x128xf32, #tpu.memory_space<vmem>>, vector<8x128xf32>
    %cst_17 = arith.constant dense<0.000000e+00> : vector<8x128xf32>
    %27 = tpu.matmul %22, %7, %cst_17 {dimension_numbers = #tpu.dot_dimension_numbers<[1], [0], [0], [1], [0, 0, 1, 1], [], []>} : vector<8x128xf32>, vector<128x128xf32>, vector<8x128xf32> -> vector<8x128xf32>
    %28 = arith.addf %26, %27 : vector<8x128xf32>
    %29 = math.tanh %28 : vector<8x128xf32>
    %c3_i32 = arith.constant 3 : i32
    %c8_i32_18 = arith.constant 8 : i32
    %30 = arith.muli %c3_i32, %c8_i32_18 : i32
    %31 = tpu.assume_multiple %30, 8 : i32
    %32 = arith.index_cast %31 : i32 to index
    %c0_19 = arith.constant 0 : index
    %33 = vector.load %arg7[%32, %c0_19] : memref<64x128xf32, #tpu.memory_space<vmem>>, vector<8x128xf32>
    %cst_20 = arith.constant dense<0.000000e+00> : vector<8x128xf32>
    %34 = tpu.matmul %29, %7, %cst_20 {dimension_numbers = #tpu.dot_dimension_numbers<[1], [0], [0], [1], [0, 0, 1, 1], [], []>} : vector<8x128xf32>, vector<128x128xf32>, vector<8x128xf32> -> vector<8x128xf32>
    %35 = arith.addf %33, %34 : vector<8x128xf32>
    %36 = math.tanh %35 : vector<8x128xf32>
    %c4_i32 = arith.constant 4 : i32
    %c8_i32_21 = arith.constant 8 : i32
    %37 = arith.muli %c4_i32, %c8_i32_21 : i32
    %38 = tpu.assume_multiple %37, 8 : i32
    %39 = arith.index_cast %38 : i32 to index
    %c0_22 = arith.constant 0 : index
    %40 = vector.load %arg7[%39, %c0_22] : memref<64x128xf32, #tpu.memory_space<vmem>>, vector<8x128xf32>
    %cst_23 = arith.constant dense<0.000000e+00> : vector<8x128xf32>
    %41 = tpu.matmul %36, %7, %cst_23 {dimension_numbers = #tpu.dot_dimension_numbers<[1], [0], [0], [1], [0, 0, 1, 1], [], []>} : vector<8x128xf32>, vector<128x128xf32>, vector<8x128xf32> -> vector<8x128xf32>
    %42 = arith.addf %40, %41 : vector<8x128xf32>
    %43 = math.tanh %42 : vector<8x128xf32>
    %c5_i32 = arith.constant 5 : i32
    %c8_i32_24 = arith.constant 8 : i32
    %44 = arith.muli %c5_i32, %c8_i32_24 : i32
    %45 = tpu.assume_multiple %44, 8 : i32
    %46 = arith.index_cast %45 : i32 to index
    %c0_25 = arith.constant 0 : index
    %47 = vector.load %arg7[%46, %c0_25] : memref<64x128xf32, #tpu.memory_space<vmem>>, vector<8x128xf32>
    %cst_26 = arith.constant dense<0.000000e+00> : vector<8x128xf32>
    %48 = tpu.matmul %43, %7, %cst_26 {dimension_numbers = #tpu.dot_dimension_numbers<[1], [0], [0], [1], [0, 0, 1, 1], [], []>} : vector<8x128xf32>, vector<128x128xf32>, vector<8x128xf32> -> vector<8x128xf32>
    %49 = arith.addf %47, %48 : vector<8x128xf32>
    %50 = math.tanh %49 : vector<8x128xf32>
    %c6_i32 = arith.constant 6 : i32
    %c8_i32_27 = arith.constant 8 : i32
    %51 = arith.muli %c6_i32, %c8_i32_27 : i32
    %52 = tpu.assume_multiple %51, 8 : i32
    %53 = arith.index_cast %52 : i32 to index
    %c0_28 = arith.constant 0 : index
    %54 = vector.load %arg7[%53, %c0_28] : memref<64x128xf32, #tpu.memory_space<vmem>>, vector<8x128xf32>
    %cst_29 = arith.constant dense<0.000000e+00> : vector<8x128xf32>
    %55 = tpu.matmul %50, %7, %cst_29 {dimension_numbers = #tpu.dot_dimension_numbers<[1], [0], [0], [1], [0, 0, 1, 1], [], []>} : vector<8x128xf32>, vector<128x128xf32>, vector<8x128xf32> -> vector<8x128xf32>
    %56 = arith.addf %54, %55 : vector<8x128xf32>
    %57 = math.tanh %56 : vector<8x128xf32>
    %c7_i32 = arith.constant 7 : i32
    %c8_i32_30 = arith.constant 8 : i32
    %58 = arith.muli %c7_i32, %c8_i32_30 : i32
    %59 = tpu.assume_multiple %58, 8 : i32
    %60 = arith.index_cast %59 : i32 to index
    %c0_31 = arith.constant 0 : index
    %61 = vector.load %arg7[%60, %c0_31] : memref<64x128xf32, #tpu.memory_space<vmem>>, vector<8x128xf32>
    %cst_32 = arith.constant dense<0.000000e+00> : vector<8x128xf32>
    %62 = tpu.matmul %57, %7, %cst_32 {dimension_numbers = #tpu.dot_dimension_numbers<[1], [0], [0], [1], [0, 0, 1, 1], [], []>} : vector<8x128xf32>, vector<128x128xf32>, vector<8x128xf32> -> vector<8x128xf32>
    %63 = arith.addf %61, %62 : vector<8x128xf32>
    %64 = math.tanh %63 : vector<8x128xf32>
    %c8_i32_33 = arith.constant 8 : i32
    %c0_34 = arith.constant 0 : index
    %c0_35 = arith.constant 0 : index
    %65 = vector.load %arg4[%c0_34, %c0_35] : memref<128x128xf32, #tpu.memory_space<vmem>>, vector<128x128xf32>
    %cst_36 = arith.constant dense<0.000000e+00> : vector<8x128xf32>
    %66 = tpu.matmul %64, %65, %cst_36 {dimension_numbers = #tpu.dot_dimension_numbers<[1], [0], [0], [1], [0, 0, 1, 1], [], []>} : vector<8x128xf32>, vector<128x128xf32>, vector<8x128xf32> -> vector<8x128xf32>
    %c0_37 = arith.constant 0 : index
    %c0_38 = arith.constant 0 : index
    %67 = vector.load %arg5[%c0_37, %c0_38] : memref<1x128xf32, #tpu.memory_space<vmem>>, vector<1x128xf32>
    %68 = vector.broadcast %67 : vector<1x128xf32> to vector<8x128xf32>
    %69 = arith.addf %66, %68 : vector<8x128xf32>
    %c0_39 = arith.constant 0 : index
    %c0_40 = arith.constant 0 : index
    %70 = vector.load %arg6[%c0_39, %c0_40] : memref<8x128xf32, #tpu.memory_space<vmem>>, vector<8x128xf32>
    tpu.vector_store %arg6[%c0_39, %c0_40], %69 {strides = array<i32>} : memref<8x128xf32, #tpu.memory_space<vmem>>, vector<8x128xf32>,
    return
  }
}

</mosaic_0001>

<bundles_post_ra>
// kernel: tpu_custom_call.1
= control target key start
LH: loop header
LB: loop body
LE: loop exit
PB: predicated region body
PF: predicated region fallthrough
CT: control target
= control target key end

     0   :  { %11 = vsyncpa [#allocation4], 0  ;;  %s819_s0 = inlined_call_operand.hbm [shape: f32[64,128], index: 0, kind: input, shape index: {}]   ;;  %s820_s1 = inlined_call_operand.hbm [shape: f32[128,128], index: 1, kind: input, shape index: {}]   ;;  %s821_s2 = inlined_call_operand.hbm [shape: f32[128,128], index: 2, kind: input, shape index: {}]   ;;  %s822_s3 = inlined_call_operand.vmem [shape: f32[1,128], index: 3, kind: input, shape index: {}]   ;;  %s823_s4 = inlined_call_operand.hbm [shape: f32[128,128], index: 4, kind: input, shape index: {}]   ;;  %s824_s5 = inlined_call_operand.vmem [shape: f32[1,128], index: 5, kind: input, shape index: {}]   ;;  %s825_s6 = inlined_call_operand.hbm [shape: f32[8,128], index: 6, kind: output, shape index: {}]  }
   0x1   :  { %12 = vsyncpa [#allocation7], 0 }
   0x2   :  { %13 = vsyncpa [#allocation10], 0 }
   0x3   :  { %14 = vsyncpa [#allocation5], 0  ;;  %s32_s23 = sshll.u32 %s820_s1, 4  ;;  %s585_s24 = smov [#allocation6]   ;;  %s33_s23 = int_to_ptr.hbm [resolvable:$true] %s32_s23 }
   0x4   :  { %s34_s25 = sshll.u32 %s585_s24, 4  ;;  %s19_s28 = sshll.u32 %s819_s0, 4  ;;  %s35_s25 = int_to_ptr.vmem [resolvable:$true] %s34_s25  ;;  %s20_s28 = int_to_ptr.hbm [resolvable:$true] %s19_s28 }
   0x5   :  { %s586_s29 = smov 128   ;;  %s587_s30 = smov 8  }
   0x6   :  { %40 = dma.hbm_to_vmem [thread:$0]  %s33_s23, 2048, %s35_s25, [#allocation7], %s586_s29, %s586_s29, %s587_s30  }
   0x7   :  { %s588_s7 = smov [#allocation3]   ;;  %s45_s11 = sshll.u32 %s821_s2, 4  ;;  %s46_s11 = int_to_ptr.hbm [resolvable:$true] %s45_s11 }
   0x8   :  { %s21_s8 = sshll.u32 %s588_s7, 4  ;;  %s60_s13 = sshll.u32 %s823_s4, 4  ;;  %s22_s8 = int_to_ptr.vmem [resolvable:$true] %s21_s8  ;;  %s61_s13 = int_to_ptr.hbm [resolvable:$true] %s60_s13 }
   0x9   :  { %27 = dma.hbm_to_vmem [thread:$0]  %s20_s28, 1024, %s22_s8, [#allocation4], %s586_s29, %s586_s29, %s587_s30  }
   0xa   :  { %s589_s14 = smov [#allocation8]   ;;  %s590_s0 = smov [#allocation9]  }
   0xb   :  { %s47_s15 = sshll.u32 %s589_s14, 4  ;;  %s62_s16 = sshll.u32 %s590_s0, 4  ;;  %s48_s15 = int_to_ptr.vmem [resolvable:$true] %s47_s15  ;;  %s63_s16 = int_to_ptr.vmem [resolvable:$true] %s62_s16 }
   0xc   :  { %53 = dma.hbm_to_vmem [thread:$0]  %s46_s11, 2048, %s48_s15, [#allocation7], %s586_s29, %s586_s29, %s587_s30  }
   0xd   :  { %68 = dma.hbm_to_vmem [thread:$0]  %s61_s13, 2048, %s63_s16, [#allocation10], %s586_s29, %s586_s29, %s587_s30  }
   0xe   :  { %577 = dma.done.wait [#allocation4], 1024  }
   0xf   :  { %578 = vsyncadd [#allocation4], 4294966272 }
  0x10   :  { %579 = dma.done.wait [#allocation7], 4096  }
  0x11   :  { %580 = vsyncadd [#allocation7], 4294963200 }
  0x12   :  { %581 = dma.done.wait [#allocation10], 2048  }
  0x13   :  { %582 = vsyncadd [#allocation10], 4294965248  ;;  %v110_v0 = vld [vmem:[#allocation6 + $0x78] sm:$0xff]  ;;  %v109_v1 = vld [vmem:[#allocation6 + $0x70] sm:$0xff]  ;;  %v591_v33 = vmov 0.0   ;;  %s592_s18 = smov [#allocation11]  }
  0x14   :  { %v640_v2 = vld [vmem:[#allocation8 + $0x78] sm:$0xff]  ;;  %115 = vmatpush.msra.mxu0 %v110_v0  ;;  %v643_v3 = vld [vmem:[#allocation8 + $0x70] sm:$0xff]  ;;  %v108_v4 = vld [vmem:[#allocation6 + $0x68] sm:$0xff]  ;;  %s417_s19 = sshll.u32 %s592_s18, 4  ;;  %s419_s22 = sshll.u32 %s825_s6, 4  ;;  %s418_s19 = int_to_ptr.vmem [resolvable:$true] %s417_s19  ;;  %s420_s22 = int_to_ptr.hbm [resolvable:$true] %s419_s22 }
  0x15   :  { %181 = vmatpush.msra.mxu1 %v640_v2  ;;  %v645_v5 = vld [vmem:[#allocation8 + $0x68] sm:$0xff]  ;;  %205 = vmatpush.msra.mxu2 %v640_v2  ;;  %v107_v6 = vld [vmem:[#allocation6 + $0x60] sm:$0xff]  ;;  %v106_v8 = vld [vmem:[#allocation6 + $0x58] sm:$0xff] }
  0x16   :  { %229 = vmatpush.msra.mxu3 %v640_v2  ;;  %116 = vmatpush.msra.mxu0 %v109_v1  ;;  %v650_v7 = vld [vmem:[#allocation8 + $0x60] sm:$0xff]  ;;  %v655_v9 = vld [vmem:[#allocation8 + $0x58] sm:$0xff]  ;;  %v105_v10 = vld [vmem:[#allocation6 + $0x50] sm:$0xff] }
  0x17   :  { %182 = vmatpush.msra.mxu1 %v643_v3  ;;  %206 = vmatpush.msra.mxu2 %v643_v3  ;;  %v660_v11 = vld [vmem:[#allocation8 + $0x50] sm:$0xff]  ;;  %v104_v12 = vld [vmem:[#allocation6 + $0x48] sm:$0xff]  ;;  %v103_v14 = vld [vmem:[#allocation6 + $0x40] sm:$0xff] }
  0x18   :  { %230 = vmatpush.msra.mxu3 %v643_v3  ;;  %117 = vmatpush.msra.mxu0 %v108_v4  ;;  %v665_v13 = vld [vmem:[#allocation8 + $0x48] sm:$0xff]  ;;  %v670_v15 = vld [vmem:[#allocation8 + $0x40] sm:$0xff]  ;;  %v102_v16 = vld [vmem:[#allocation6 + $0x38] sm:$0xff] }
  0x19   :  { %183 = vmatpush.msra.mxu1 %v645_v5  ;;  %207 = vmatpush.msra.mxu2 %v645_v5  ;;  %v675_v17 = vld [vmem:[#allocation8 + $0x38] sm:$0xff]  ;;  %v101_v18 = vld [vmem:[#allocation6 + $0x30] sm:$0xff]  ;;  %v100_v20 = vld [vmem:[#allocation6 + $0x28] sm:$0xff] }
  0x1a   :  { %231 = vmatpush.msra.mxu3 %v645_v5  ;;  %118 = vmatpush.msra.mxu0 %v107_v6  ;;  %v680_v19 = vld [vmem:[#allocation8 + $0x30] sm:$0xff]  ;;  %v685_v21 = vld [vmem:[#allocation8 + $0x28] sm:$0xff]  ;;  %v99_v22 = vld [vmem:[#allocation6 + $0x20] sm:$0xff] }
  0x1b   :  { %184 = vmatpush.msra.mxu1 %v650_v7  ;;  %208 = vmatpush.msra.mxu2 %v650_v7  ;;  %v690_v23 = vld [vmem:[#allocation8 + $0x20] sm:$0xff]  ;;  %v98_v24 = vld [vmem:[#allocation6 + $0x18] sm:$0xff]  ;;  %v97_v26 = vld [vmem:[#allocation6 + $0x10] sm:$0xff] }
  0x1c   :  { %232 = vmatpush.msra.mxu3 %v650_v7  ;;  %119 = vmatpush.msra.mxu0 %v106_v8  ;;  %v695_v25 = vld [vmem:[#allocation8 + $0x18] sm:$0xff]  ;;  %v700_v27 = vld [vmem:[#allocation8 + $0x10] sm:$0xff]  ;;  %v96_v28 = vld [vmem:[#allocation6 + $0x8] sm:$0xff] }
  0x1d   :  { %185 = vmatpush.msra.mxu1 %v655_v9  ;;  %209 = vmatpush.msra.mxu2 %v655_v9  ;;  %v705_v29 = vld [vmem:[#allocation8 + $0x8] sm:$0xff]  ;;  %v95_v30 = vld [vmem:[#allocation6] sm:$0xff]  ;;  %v89_v41 = vld [vmem:[#allocation3 + $0x10] sm:$0xff] }
  0x1e   :  { %233 = vmatpush.msra.mxu3 %v655_v9  ;;  %120 = vmatpush.msra.mxu0 %v105_v10  ;;  %v710_v31 = vld [vmem:[#allocation8] sm:$0xff]  ;;  %v88_v34 = vld [vmem:[#allocation3 + $0x8] sm:$0xff]  ;;  %v90_v47 = vld [vmem:[#allocation3 + $0x18] sm:$0xff] }
  0x1f   :  { %186 = vmatpush.msra.mxu1 %v660_v11  ;;  %210 = vmatpush.msra.mxu2 %v660_v11  ;;  %v87_v32 = vld [vmem:[#allocation3] sm:$0xff]  ;;  %v92_v59 = vld [vmem:[#allocation3 + $0x28] sm:$0xff]  ;;  %v93_v60 = vld [vmem:[#allocation3 + $0x30] sm:$0xff] }
  0x20   :  { %234 = vmatpush.msra.mxu3 %v660_v11  ;;  %121 = vmatpush.msra.mxu0 %v104_v12  ;;  %v803_v35 = vld [vmem:[%s822_s3] ss:$0 sm:$0xff]  ;;  %v386_v8 = vld [vmem:[#allocation9 + $0x78] sm:$0xff] }
  0x21   :  { %187 = vmatpush.msra.mxu1 %v665_v13  ;;  %211 = vmatpush.msra.mxu2 %v665_v13  ;;  %v91_v53 = vld [vmem:[#allocation3 + $0x20] sm:$0xff] }
  0x22   :  { %235 = vmatpush.msra.mxu3 %v665_v13  ;;  %122 = vmatpush.msra.mxu0 %v103_v14  ;;  %v383_v12 = vld [vmem:[#allocation9 + $0x60] sm:$0xff]  ;;  %v381_v14 = vld [vmem:[#allocation9 + $0x50] sm:$0xff] }
  0x23   :  { %188 = vmatpush.msra.mxu1 %v670_v15  ;;  %212 = vmatpush.msra.mxu2 %v670_v15 }
  0x24   :  { %236 = vmatpush.msra.mxu3 %v670_v15  ;;  %123 = vmatpush.msra.mxu0 %v102_v16 }
  0x25   :  { %189 = vmatpush.msra.mxu1 %v675_v17  ;;  %213 = vmatpush.msra.mxu2 %v675_v17 }
  0x26   :  { %237 = vmatpush.msra.mxu3 %v675_v17  ;;  %124 = vmatpush.msra.mxu0 %v101_v18  ;;  %v378_v18 = vld [vmem:[#allocation9 + $0x38] sm:$0xff] }
  0x27   :  { %190 = vmatpush.msra.mxu1 %v680_v19  ;;  %214 = vmatpush.msra.mxu2 %v680_v19 }
  0x28   :  { %238 = vmatpush.msra.mxu3 %v680_v19  ;;  %125 = vmatpush.msra.mxu0 %v100_v20  ;;  %v376_v20 = vld [vmem:[#allocation9 + $0x28] sm:$0xff] }
  0x29   :  { %191 = vmatpush.msra.mxu1 %v685_v21  ;;  %215 = vmatpush.msra.mxu2 %v685_v21 }
  0x2a   :  { %239 = vmatpush.msra.mxu3 %v685_v21  ;;  %126 = vmatpush.msra.mxu0 %v99_v22 }
  0x2b   :  { %192 = vmatpush.msra.mxu1 %v690_v23  ;;  %216 = vmatpush.msra.mxu2 %v690_v23 }
  0x2c   :  { %240 = vmatpush.msra.mxu3 %v690_v23  ;;  %127 = vmatpush.msra.mxu0 %v98_v24 }
  0x2d   :  { %193 = vmatpush.msra.mxu1 %v695_v25  ;;  %217 = vmatpush.msra.mxu2 %v695_v25 }
  0x2e   :  { %241 = vmatpush.msra.mxu3 %v695_v25  ;;  %128 = vmatpush.msra.mxu0 %v97_v26  ;;  %v374_v26 = vld [vmem:[#allocation9 + $0x18] sm:$0xff] }
  0x2f   :  { %194 = vmatpush.msra.mxu1 %v700_v27  ;;  %218 = vmatpush.msra.mxu2 %v700_v27 }
  0x30   :  { %242 = vmatpush.msra.mxu3 %v700_v27  ;;  %129 = vmatpush.msra.mxu0 %v96_v28  ;;  %v372_v28 = vld [vmem:[#allocation9 + $0x8] sm:$0xff] }
  0x31   :  { %195 = vmatpush.msra.mxu1 %v705_v29  ;;  %219 = vmatpush.msra.mxu2 %v705_v29 }
  0x32   :  { %243 = vmatpush.msra.mxu3 %v705_v29  ;;  %130 = vmatpush.msra.mxu0 %v95_v30 }
  0x33   :  { %196 = vmatpush.msra.mxu1 %v710_v31  ;;  %131 = vmatmul.f32.vlgmr.msra.gmra.mxu0 %v87_v32 }
  0x34   :  { %197 = vmatmul.f32.vlgmr.msra.gmra.mxu1 %v591_v33  ;;  %220 = vmatpush.msra.mxu2 %v710_v31 }
  0x35   :  { %244 = vmatpush.msra.mxu3 %v710_v31  ;;  %253 = vmatpush.msrb.mxu1 %v640_v2 }
  0x36   :  { %277 = vmatpush.msrb.mxu2 %v640_v2  ;;  %325 = vmatpush.msrb.mxu0 %v640_v2 }
  0x37   :  { %301 = vmatpush.msrb.mxu3 %v640_v2  ;;  %254 = vmatpush.msrb.mxu1 %v643_v3 }
  0x38   :  { %278 = vmatpush.msrb.mxu2 %v643_v3  ;;  %326 = vmatpush.msrb.mxu0 %v643_v3 }
  0x39   :  { %302 = vmatpush.msrb.mxu3 %v643_v3  ;;  %255 = vmatpush.msrb.mxu1 %v645_v5 }
  0x3a   :  { %279 = vmatpush.msrb.mxu2 %v645_v5  ;;  %327 = vmatpush.msrb.mxu0 %v645_v5 }
  0x3b   :  { %303 = vmatpush.msrb.mxu3 %v645_v5  ;;  %256 = vmatpush.msrb.mxu1 %v650_v7 }
  0x3c   :  { %280 = vmatpush.msrb.mxu2 %v650_v7  ;;  %328 = vmatpush.msrb.mxu0 %v650_v7 }
  0x3d   :  { %304 = vmatpush.msrb.mxu3 %v650_v7  ;;  %257 = vmatpush.msrb.mxu1 %v655_v9 }
  0x3e   :  { %281 = vmatpush.msrb.mxu2 %v655_v9  ;;  %329 = vmatpush.msrb.mxu0 %v655_v9 }
  0x3f   :  { %305 = vmatpush.msrb.mxu3 %v655_v9  ;;  %258 = vmatpush.msrb.mxu1 %v660_v11 }
  0x40   :  { %282 = vmatpush.msrb.mxu2 %v660_v11  ;;  %330 = vmatpush.msrb.mxu0 %v660_v11 }
  0x41   :  { %306 = vmatpush.msrb.mxu3 %v660_v11  ;;  %259 = vmatpush.msrb.mxu1 %v665_v13 }
  0x42   :  { %283 = vmatpush.msrb.mxu2 %v665_v13  ;;  %331 = vmatpush.msrb.mxu0 %v665_v13 }
  0x43   :  { %307 = vmatpush.msrb.mxu3 %v665_v13  ;;  %260 = vmatpush.msrb.mxu1 %v670_v15 }
  0x44   :  { %284 = vmatpush.msrb.mxu2 %v670_v15  ;;  %332 = vmatpush.msrb.mxu0 %v670_v15 }
  0x45   :  { %308 = vmatpush.msrb.mxu3 %v670_v15  ;;  %261 = vmatpush.msrb.mxu1 %v675_v17 }
  0x46   :  { %285 = vmatpush.msrb.mxu2 %v675_v17  ;;  %333 = vmatpush.msrb.mxu0 %v675_v17 }
  0x47   :  { %309 = vmatpush.msrb.mxu3 %v675_v17  ;;  %262 = vmatpush.msrb.mxu1 %v680_v19 }
  0x48   :  { %286 = vmatpush.msrb.mxu2 %v680_v19  ;;  %334 = vmatpush.msrb.mxu0 %v680_v19 }
  0x49   :  { %310 = vmatpush.msrb.mxu3 %v680_v19  ;;  %263 = vmatpush.msrb.mxu1 %v685_v21 }
  0x4a   :  { %287 = vmatpush.msrb.mxu2 %v685_v21  ;;  %335 = vmatpush.msrb.mxu0 %v685_v21 }
  0x4b   :  { %311 = vmatpush.msrb.mxu3 %v685_v21  ;;  %264 = vmatpush.msrb.mxu1 %v690_v23 }
  0x4c   :  { %288 = vmatpush.msrb.mxu2 %v690_v23  ;;  %336 = vmatpush.msrb.mxu0 %v690_v23 }
  0x4d   :  { %312 = vmatpush.msrb.mxu3 %v690_v23  ;;  %265 = vmatpush.msrb.mxu1 %v695_v25 }
  0x4e   :  { %289 = vmatpush.msrb.mxu2 %v695_v25  ;;  %337 = vmatpush.msrb.mxu0 %v695_v25 }
  0x4f   :  { %313 = vmatpush.msrb.mxu3 %v695_v25  ;;  %266 = vmatpush.msrb.mxu1 %v700_v27 }
  0x50   :  { %290 = vmatpush.msrb.mxu2 %v700_v27  ;;  %338 = vmatpush.msrb.mxu0 %v700_v27 }
  0x51   :  { %314 = vmatpush.msrb.mxu3 %v700_v27  ;;  %267 = vmatpush.msrb.mxu1 %v705_v29 }
  0x52   :  { %291 = vmatpush.msrb.mxu2 %v705_v29  ;;  %339 = vmatpush.msrb.mxu0 %v705_v29 }
  0x53   :  { %315 = vmatpush.msrb.mxu3 %v705_v29  ;;  %268 = vmatpush.msrb.mxu1 %v710_v31 }
  0x54   :  { %292 = vmatpush.msrb.mxu2 %v710_v31  ;;  %340 = vmatpush.msrb.mxu0 %v710_v31 }
  0x55   :  { %316 = vmatpush.msrb.mxu3 %v710_v31  ;;  %349 = vmatpush.msra.mxu1 %v640_v2  ;;  %v94_v2 = vld [vmem:[#allocation3 + $0x38] sm:$0xff] }
  0x56   :  { %134 = vmatmul.f32.gmra.mxu0 %v88_v34  ;;  %v440_v34 = vld [vmem:[%s824_s5] ss:$0 sm:$0xff] }
  0x57   :  { %350 = vmatpush.msra.mxu1 %v643_v3 }
  0x59   :  { %351 = vmatpush.msra.mxu1 %v645_v5 }
  0x5b   :  { %352 = vmatpush.msra.mxu1 %v650_v7 }
  0x5d   :  { %353 = vmatpush.msra.mxu1 %v655_v9  ;;  %v385_v9 = vld [vmem:[#allocation9 + $0x70] sm:$0xff] }
  0x5e   :  { %137 = vmatmul.f32.gmra.mxu0 %v89_v41 }
  0x5f   :  { %354 = vmatpush.msra.mxu1 %v660_v11  ;;  %v384_v11 = vld [vmem:[#allocation9 + $0x68] sm:$0xff] }
  0x61   :  { %355 = vmatpush.msra.mxu1 %v665_v13  ;;  %v382_v13 = vld [vmem:[#allocation9 + $0x58] sm:$0xff] }
  0x63   :  { %356 = vmatpush.msra.mxu1 %v670_v15  ;;  %v380_v15 = vld [vmem:[#allocation9 + $0x48] sm:$0xff] }
  0x65   :  { %357 = vmatpush.msra.mxu1 %v675_v17  ;;  %v379_v17 = vld [vmem:[#allocation9 + $0x40] sm:$0xff] }
  0x66   :  { %140 = vmatmul.f32.gmra.mxu0 %v90_v47 }
  0x67   :  { %358 = vmatpush.msra.mxu1 %v680_v19  ;;  %v377_v19 = vld [vmem:[#allocation9 + $0x30] sm:$0xff] }
  0x69   :  { %359 = vmatpush.msra.mxu1 %v685_v21 }
  0x6b   :  { %360 = vmatpush.msra.mxu1 %v690_v23 }
  0x6d   :  { %361 = vmatpush.msra.mxu1 %v695_v25  ;;  %v375_v25 = vld [vmem:[#allocation9 + $0x20] sm:$0xff] }
  0x6e   :  { %143 = vmatmul.f32.gmra.mxu0 %v91_v53 }
  0x6f   :  { %362 = vmatpush.msra.mxu1 %v700_v27  ;;  %v373_v27 = vld [vmem:[#allocation9 + $0x10] sm:$0xff] }
  0x71   :  { %363 = vmatpush.msra.mxu1 %v705_v29  ;;  %v371_v29 = vld [vmem:[#allocation9] sm:$0xff] }
  0x73   :  { %364 = vmatpush.msra.mxu1 %v710_v31 }
  0x76   :  { %146 = vmatmul.f32.gmra.mxu0 %v92_v59 }
  0x7e   :  { %149 = vmatmul.f32.gmra.mxu0 %v93_v60 }
  0x86   :  { %152 = vmatmul.f32.gmra.mxu0 %v94_v2 }
  0xb0   :  { %v132_v36 = vpop.f32.mrf.mxu0 }
  0xb1   :  { %v198_v37 = vpop.f32.mrf.mxu1  ;;  %v133_v38 = vadd.f32 %v803_v35, %v132_v36 }
  0xb3   :  { %v201_v39 = vadd.f32 %v198_v37, %v133_v38 }
  0xb5   :  { %441 = vtanh.f32 %v201_v39 }
  0xbb   :  { %v442_v40 = vpop.eup %441 }
  0xbc   :  { %221 = vmatmul.f32.vlgmr.msra.gmra.mxu2 %v442_v40 }
  0xbd   :  { %391 = vmatpush.msra.mxu2 %v386_v8 }
  0xbf   :  { %392 = vmatpush.msra.mxu2 %v385_v9 }
  0xc1   :  { %393 = vmatpush.msra.mxu2 %v384_v11 }
  0xc3   :  { %394 = vmatpush.msra.mxu2 %v383_v12 }
  0xc5   :  { %395 = vmatpush.msra.mxu2 %v382_v13 }
  0xc7   :  { %396 = vmatpush.msra.mxu2 %v381_v14 }
  0xc9   :  { %397 = vmatpush.msra.mxu2 %v380_v15 }
  0xcb   :  { %398 = vmatpush.msra.mxu2 %v379_v17 }
  0xcd   :  { %399 = vmatpush.msra.mxu2 %v378_v18 }
  0xcf   :  { %400 = vmatpush.msra.mxu2 %v377_v19 }
  0xd1   :  { %401 = vmatpush.msra.mxu2 %v376_v20 }
  0xd3   :  { %v135_v42 = vpop.f32.mrf.mxu0  ;;  %402 = vmatpush.msra.mxu2 %v375_v25 }
  0xd4   :  { %v136_v43 = vadd.f32 %v803_v35, %v135_v42 }
  0xd5   :  { %403 = vmatpush.msra.mxu2 %v374_v26 }
  0xd7   :  { %404 = vmatpush.msra.mxu2 %v373_v27 }
  0xd9   :  { %405 = vmatpush.msra.mxu2 %v372_v28 }
  0xdb   :  { %v138_v48 = vpop.f32.mrf.mxu0  ;;  %406 = vmatpush.msra.mxu2 %v371_v29 }
  0xdc   :  { %v139_v49 = vadd.f32 %v803_v35, %v138_v48 }
  0xe3   :  { %v141_v54 = vpop.f32.mrf.mxu0 }
  0xe4   :  { %v142_v55 = vadd.f32 %v803_v35, %v141_v54 }
  0xeb   :  { %v144_v61 = vpop.f32.mrf.mxu0 }
  0xec   :  { %v145_v62 = vadd.f32 %v803_v35, %v144_v61 }
  0xf3   :  { %v147_v3 = vpop.f32.mrf.mxu0 }
  0xf4   :  { %v148_v4 = vadd.f32 %v803_v35, %v147_v3 }
  0xfb   :  { %v150_v10 = vpop.f32.mrf.mxu0 }
  0xfc   :  { %v151_v21 = vadd.f32 %v803_v35, %v150_v10 }
 0x103   :  { %v153_v16 = vpop.f32.mrf.mxu0 }
 0x104   :  { %v154_v30 = vadd.f32 %v803_v35, %v153_v16 }
 0x13f   :  { %v222_v44 = vpop.f32.mrf.mxu2 }
 0x140   :  { %v225_v45 = vadd.f32 %v222_v44, %v136_v43 }
 0x142   :  { %443 = vtanh.f32 %v225_v45 }
 0x148   :  { %v444_v46 = vpop.eup %443 }
 0x149   :  { %245 = vmatmul.f32.vlgmr.msra.gmra.mxu3 %v444_v46 }
 0x1cc   :  { %v246_v50 = vpop.f32.mrf.mxu3 }
 0x1cd   :  { %v249_v51 = vadd.f32 %v246_v50, %v139_v49 }
 0x1cf   :  { %445 = vtanh.f32 %v249_v51 }
 0x1d5   :  { %v446_v52 = vpop.eup %445 }
 0x1d6   :  { %269 = vmatmul.f32.vlgmr.msrb.gmra.mxu1 %v446_v52 }
 0x253   :  { %v270_v56 = vpop.f32.mrf.mxu1 }
 0x254   :  { %v273_v57 = vadd.f32 %v270_v56, %v142_v55 }
 0x256   :  { %447 = vtanh.f32 %v273_v57 }
 0x25c   :  { %v448_v58 = vpop.eup %447 }
 0x25d   :  { %293 = vmatmul.f32.vlgmr.msrb.gmra.mxu2 %v448_v58 }
 0x2e0   :  { %v294_v63 = vpop.f32.mrf.mxu2 }
 0x2e1   :  { %v297_v0 = vadd.f32 %v294_v63, %v145_v62 }
 0x2e3   :  { %449 = vtanh.f32 %v297_v0 }
 0x2e9   :  { %v450_v1 = vpop.eup %449 }
 0x2ea   :  { %317 = vmatmul.f32.vlgmr.msrb.gmra.mxu3 %v450_v1 }
 0x36d   :  { %v318_v5 = vpop.f32.mrf.mxu3 }
 0x36e   :  { %v321_v6 = vadd.f32 %v318_v5, %v148_v4 }
 0x370   :  { %451 = vtanh.f32 %v321_v6 }
 0x376   :  { %v452_v7 = vpop.eup %451 }
 0x377   :  { %341 = vmatmul.f32.vlgmr.msrb.gmra.mxu0 %v452_v7 }
 0x3f4   :  { %v342_v22 = vpop.f32.mrf.mxu0 }
 0x3f5   :  { %v345_v23 = vadd.f32 %v342_v22, %v151_v21 }
 0x3f7   :  { %453 = vtanh.f32 %v345_v23 }
 0x3fd   :  { %v454_v24 = vpop.eup %453 }
 0x3fe   :  { %365 = vmatmul.f32.vlgmr.msra.gmra.mxu1 %v454_v24 }
 0x47b   :  { %v366_v31 = vpop.f32.mrf.mxu1 }
 0x47c   :  { %v369_v32 = vadd.f32 %v366_v31, %v154_v30 }
 0x47e   :  { %455 = vtanh.f32 %v369_v32 }
 0x484   :  { %v456_v33 = vpop.eup %455 }
 0x485   :  { %407 = vmatmul.f32.vlgmr.msra.gmra.mxu2 %v456_v33 }
 0x508   :  { %v408_v36 = vpop.f32.mrf.mxu2 }
 0x509   :  { %v409_v37 = vadd.f32 %v440_v34, %v408_v36 }
 0x50b   :  { %411 = vst [vmem:[#allocation11] sm:$0xff] %v409_v37 }
 0x50c   :  { %422 = dma.vmem_to_hbm [thread:$0]  %s418_s19, 128, %s420_s22, [#allocation5]  }
 0x50d   :  { %583 = dma.done.wait [#allocation5], 128  }
 0x50e   :  { %584 = vsyncadd [#allocation5], 4294967168 }
 0x50f   :  { %427 = vsyncpa [#allocation4], 1 }
 0x510   :  { %428 = vsyncpa [#allocation7], 1 }
 0x511   :  { %429 = vsyncpa [#allocation10], 1 }
 0x512   :  { %430 = vsyncpa [#allocation5], 1 }

</bundles_post_ra>
